<compile_context>
chip_gen: v7x
topology: tpu7x:2x2x1
jax: 0.10.0
libtpu: 0.0.40
codegen_flags: <defaults>
</compile_context>

<pallas_src>
import jax
import jax.numpy as jnp
from jax import lax
from jax.experimental import pallas as pl
from jax.experimental.pallas import tpu as pltpu

TEMPERATURE = 0.07        # stand-in for self.model.temperature
EPS_NORM = 1e-12          # F.normalize eps
EPS_LOG = 1e-8


def _round_up(x, m):
    return (x + m - 1) // m * m


def _vmem_capacity_bytes():
    """Per-generation VMEM capacity (128 MiB v5e/v6e, 64 MiB v7x)."""
    try:
        info = pltpu.get_tpu_info()
        cap = int(getattr(info, "vmem_capacity_bytes", 0))
        if cap > 0:
            return cap
    except Exception:
        pass
    return 64 << 20   # conservative fallback (v7x per-TC VMEM)


def _vmem_spec():
    return pl.BlockSpec(memory_space=pltpu.MemorySpace.VMEM)


def _smem_spec():
    return pl.BlockSpec(memory_space=pltpu.MemorySpace.SMEM)


# ---------------------------------------------------------------------------
# Kernel A: fused cosine scores + class probabilities + argmax + re-softmax.
# Everything stays VMEM-resident; p_fg is emitted already transposed.
# ---------------------------------------------------------------------------
def _make_cls_kernel(c_real, inv_temp):
    def kernel(num_ref, emb_ref, txtn_ref, void_ref,
               out_vocab_ref, logp_fg_ref, logp_void_ref, labels_ref, pfgT_ref):
        # L2-normalize region embeddings (class table is pre-normalized in the
        # wrapper).  rsqrt lands on the EUP, keeping VALU slots free.
        emb = emb_ref[...].astype(jnp.float32)                       # [Qp, Dp]
        inv_norm = lax.rsqrt(jnp.maximum(
            jnp.sum(emb * emb, axis=-1, keepdims=True), EPS_NORM * EPS_NORM))
        emb_n = (emb * inv_norm).astype(jnp.bfloat16)

        # bf16 MXU cosine matmul, f32 accumulation, 1/temperature scale.
        scores = lax.dot_general(
            emb_n, txtn_ref[...],
            (((1,), (1,)), ((), ())),
            preferred_element_type=jnp.float32) * inv_temp            # [Qp, Cp]

        qp, cp = scores.shape
        row = lax.broadcasted_iota(jnp.int32, (qp, cp), 0)
        col = lax.broadcasted_iota(jnp.int32, (qp, cp), 1)
        valid_row = row < num_ref[0]
        valid_col = col < c_real

        # out_vocab_cls_results: zeros except the first `num` rows / real cols.
        out_vocab = jnp.where(valid_row & valid_col, scores, 0.0)
        out_vocab_ref[...] = out_vocab

        # softmax over the real classes (padded cols excluded).  Exact divide:
        # this path feeds pred_labels (argmax), no approx reciprocal here.
        x = jnp.where(valid_col, out_vocab, -jnp.inf)
        m = jnp.max(x, axis=-1, keepdims=True)
        e = jnp.exp(x - m)
        p = e / jnp.sum(e, axis=-1, keepdims=True)

        void = void_ref[...]                                          # [Qp, 1]
        probs_fg = p * (1.0 - void)
        logp_fg = jnp.log(probs_fg + EPS_LOG)                         # [Qp, Cp]
        logp_void = jnp.log(void + EPS_LOG)                           # [Qp, 1]
        logp_fg_ref[...] = logp_fg
        # lane-dense store of the [Q,1] quantity (wrapper reads column 0)
        logp_void_ref[...] = jnp.broadcast_to(logp_void, (qp, 128))

        # argmax over the virtual concat [fg | void].  log is strictly monotone,
        # so argmax on probs directly == argmax on log(probs+eps); void (last
        # column) only wins on a strict '>'.
        pm = jnp.where(valid_col, probs_fg, -1.0)
        max_p = jnp.max(pm, axis=-1, keepdims=True)
        idx_fg = jnp.min(
            jnp.where(valid_col & (pm == max_p), col, jnp.int32(cp + 1)),
            axis=-1, keepdims=True)
        labels = jnp.where(max_p >= void, idx_fg, jnp.int32(c_real))
        labels_ref[...] = jnp.broadcast_to(labels, (qp, 128)).astype(jnp.int32)

        # semantic_inference re-softmax: softmax(log(p+eps) cat log(void+eps))
        # over [C+1], drop void.  softmax(log(a)) == a / sum(a): no exp pass.
        num_fg = jnp.where(valid_col, probs_fg + EPS_LOG, 0.0)        # [Qp, Cp]
        denom = jnp.sum(num_fg, axis=-1, keepdims=True) + (void + EPS_LOG)
        p_fg = num_fg / denom                                          # exact div
        # emit already transposed (Kernel B lhs); f32 XLU transpose, then cast.
        pfgT_ref[...] = jnp.transpose(p_fg).astype(jnp.bfloat16)
    return kernel


def classification(num_arr, emb_p, txtn_p, void_p, c_real):
    q_pad, d_pad = emb_p.shape
    c_pad, _ = txtn_p.shape
    cap = _vmem_capacity_bytes()
    # live-bytes estimate: bf16 inputs + f32 emb copy + ~10 f32 [Qp,Cp]
    # intermediates/outputs + small vectors + margin.
    a_bytes = (c_pad * d_pad * 2 + q_pad * d_pad * (2 + 4)
               + 10 * q_pad * c_pad * 4 + q_pad * 128 * 8
               + c_pad * q_pad * 2 + (2 << 20))
    vmem_a = int(min(max(a_bytes, 8 << 20), int(cap * 0.625)))
    kernel = _make_cls_kernel(c_real, 1.0 / TEMPERATURE)
    return pl.pallas_call(
        kernel,
        out_shape=(
            jax.ShapeDtypeStruct((q_pad, c_pad), jnp.float32),   # out_vocab
            jax.ShapeDtypeStruct((q_pad, c_pad), jnp.float32),   # logp_fg
            jax.ShapeDtypeStruct((q_pad, 128), jnp.float32),     # logp_void (bcast)
            jax.ShapeDtypeStruct((q_pad, 128), jnp.int32),       # pred_labels (bcast)
            jax.ShapeDtypeStruct((c_pad, q_pad), jnp.bfloat16),  # p_fg^T for semseg
        ),
        in_specs=[_smem_spec(), _vmem_spec(), _vmem_spec(), _vmem_spec()],
        out_specs=(_vmem_spec(),) * 5,
        compiler_params=pltpu.CompilerParams(vmem_limit_bytes=vmem_a),
    )(num_arr, emb_p, txtn_p, void_p)


# ---------------------------------------------------------------------------
# Kernel B: semseg = p_fg^T @ masks.  1-D grid over HW; p_fg^T stays resident,
# masks streamed once from HBM (f32, cast to bf16 per tile), bf16 output.
# ---------------------------------------------------------------------------
def _semseg_kernel(pfgT_ref, mask_ref, out_ref):
    masks_bf16 = mask_ref[...].astype(jnp.bfloat16)                   # [Q, hw_t]
    out_ref[...] = jnp.dot(pfgT_ref[...], masks_bf16,
                           preferred_element_type=jnp.float32
                           ).astype(out_ref.dtype)


def _pick_hw_tile(hw, q, c_pad, cap):
    """Largest HW tile whose double-buffered blocks fit a VMEM budget."""
    budget = max(int(cap * 0.45), 4 << 20)
    full = _round_up(hw, 128)
    for t in (8192, 4096, 2048, 1024, 512, 256, 128):
        t = min(t, full)
        step_bytes = 2 * t * (4 * q + 2 * c_pad) + 4 * c_pad * q
        if step_bytes <= budget:
            return max(t, 128)
    return 128


def semantic_inference(p_fg_T, masks, hw_tile):
    c_pad, q = p_fg_T.shape
    _, hw = masks.shape
    grid = (pl.cdiv(hw, hw_tile),)
    cap = _vmem_capacity_bytes()
    # double-buffered mask (f32) + output (bf16) tiles + resident p_fg block.
    block_bytes = (2 * q * hw_tile * 4) + (2 * c_pad * hw_tile * 2) + (2 * c_pad * q * 2)
    vmem_limit = int(min(max(block_bytes + (block_bytes >> 2) + (2 << 20), 8 << 20),
                         int(cap * 0.625)))
    return pl.pallas_call(
        _semseg_kernel,
        out_shape=jax.ShapeDtypeStruct((c_pad, hw), jnp.bfloat16),
        grid_spec=pltpu.PrefetchScalarGridSpec(
            num_scalar_prefetch=0,
            grid=grid,
            in_specs=[
                pl.BlockSpec((c_pad, q), lambda hi: (0, 0)),     # resident lhs
                pl.BlockSpec((q, hw_tile), lambda hi: (0, hi)),  # streamed masks
            ],
            out_specs=pl.BlockSpec((c_pad, hw_tile), lambda hi: (0, hi)),
        ),
        compiler_params=pltpu.CompilerParams(
            dimension_semantics=("parallel",),   # megacore-shards HW tiles on v7x
            vmem_limit_bytes=vmem_limit),
    )(p_fg_T, masks)


# ---------------------------------------------------------------------------
# Forward wrapper (single image; batch dim of 1 implicit).
# ---------------------------------------------------------------------------
def eval_osprey_forward(region_emb, class_sentence_emb, mask_pred, is_void, num):
    """region_emb: [Q, D] bf16 (rows >= num are padding)
       class_sentence_emb: [C, D] bf16
       mask_pred: [Q, H, W] f32 (mask_for_pooling_raw)
       is_void: [Q, 1] f32
       num: python int, number of valid regions."""
    Q, D = region_emb.shape
    C, _ = class_sentence_emb.shape
    QH, H, W = mask_pred.shape
    HW = H * W

    Q_pad = _round_up(Q, 16)          # bf16 sublane packing
    C_pad = _round_up(C, 128)         # lane-dense class axis
    D_pad = _round_up(D, 128)         # lane-dense feature axis

    # Class table: normalize ONCE outside the kernel (constant per model; in
    # deployment this is precomputed, not per image) and pass pre-normalized bf16.
    txt = class_sentence_emb.astype(jnp.float32)
    txt_n = txt * lax.rsqrt(jnp.maximum(
        jnp.sum(txt * txt, axis=-1, keepdims=True), EPS_NORM * EPS_NORM))
    txtn_p = jnp.zeros((C_pad, D_pad), jnp.bfloat16).at[:C, :D].set(
        txt_n.astype(jnp.bfloat16))

    emb_p = jnp.zeros((Q_pad, D_pad), jnp.bfloat16).at[:Q, :D].set(
        region_emb.astype(jnp.bfloat16))
    void_p = jnp.ones((Q_pad, 1), jnp.float32).at[:Q, :].set(
        is_void.astype(jnp.float32))
    num_arr = jnp.asarray([num], dtype=jnp.int32)

    # ---- fused classification kernel ----
    out_vocab_p, logp_fg_p, logp_void_p, labels_p, p_fg_T_p = classification(
        num_arr, emb_p, txtn_p, void_p, C)

    # ---- tiled semantic_inference: p_fg^T [C,Q] @ masks [Q,HW] ----
    masks_flat = mask_pred.reshape(Q, HW)          # layout-only reshape, no copy
    p_fg_T = p_fg_T_p[:, :Q]                       # tiny [C_pad, Q] bf16 slice
    cap = _vmem_capacity_bytes()
    hw_tile = _pick_hw_tile(HW, Q, C_pad, cap)
    semseg_p = semantic_inference(p_fg_T, masks_flat, hw_tile)  # [C_pad, HW] bf16

    # ---- strip padding / assemble outputs (pure layout, off the hot path) ----
    out_vocab = out_vocab_p[:Q, :C]                                   # [Q, C]
    mask_cls_results = jnp.concatenate(
        [logp_fg_p[:Q, :C], logp_void_p[:Q, :1]], axis=-1)            # [Q, C+1]
    pred_labels = labels_p[:Q, 0]                                     # [Q] int32
    sem_seg = semseg_p[:C, :].reshape(C, H, W)                        # [C,H,W] bf16

    # TODO(synk): panoptic_inference / instance_inference (topk + data-dependent
    # boolean filtering over variable-length segment lists) have no clean static
    # Pallas equivalent and are not implemented.
    return {
        "out_vocab_cls_results": out_vocab,
        "mask_cls_results": mask_cls_results,
        "pred_labels": pred_labels,
        "sem_seg": sem_seg,
    }


if __name__ == "__main__":
    # Small synthetic shapes consistent with the module's forward:
    #   num_queries Q = 8, len_data C = 16, embed dim D = 32, masks H = W = 16,
    #   num (valid regions) = 6.
    Q, C, D, H, W, NUM = 8, 16, 32, 16, 16, 6

    key = jax.random.PRNGKey(0)
    k1, k2, k3 = jax.random.split(key, 3)

    # Stand-ins for model.mask_extractor output and self.class_sentence_embeddings
    # (bfloat16 in the original module); padding rows of region_emb are zero.
    region_emb = jax.random.normal(k1, (Q, D), dtype=jnp.float32)
    row_valid = (jnp.arange(Q) < NUM).astype(jnp.float32)[:, None]
    region_emb = (region_emb * row_valid).astype(jnp.bfloat16)
    class_emb = jax.random.normal(k2, (C, D), dtype=jnp.float32).astype(jnp.bfloat16)

    # Stand-ins for mask_for_pooling_raw[0] and is_void_prob[0] from get_gt_label.
    mask_pred = (jax.random.uniform(k3, (Q, H, W)) > 0.5).astype(jnp.float32)
    is_void = (jnp.arange(Q) >= NUM).astype(jnp.float32).reshape(Q, 1)

    out = eval_osprey_forward(region_emb, class_emb, mask_pred, is_void, NUM)
    jax.block_until_ready(out)
    print("KERNEL_OK")
</pallas_src>

<mosaic_0001>
module attributes {stable_mosaic.version = 11 : i64} {
  func.func @kernel(%arg0: memref<1xi32, #tpu.memory_space<smem>>, %arg1: memref<16x128xbf16, #tpu.memory_space<vmem>>, %arg2: memref<128x128xbf16, #tpu.memory_space<vmem>>, %arg3: memref<16x1xf32, #tpu.memory_space<vmem>>, %arg4: memref<16x128xf32, #tpu.memory_space<vmem>>, %arg5: memref<16x128xf32, #tpu.memory_space<vmem>>, %arg6: memref<16x128xf32, #tpu.memory_space<vmem>>, %arg7: memref<16x128xi32, #tpu.memory_space<vmem>>, %arg8: memref<128x16xbf16, #tpu.memory_space<vmem>>) attributes {dimension_semantics = [], scalar_prefetch = 0 : i64, scratch_operands = 0 : i64, tpu.core_type = #tpu.core_type<tc>} {
    %c0 = arith.constant 0 : index
    %c0_0 = arith.constant 0 : index
    %0 = vector.load %arg1[%c0, %c0_0] : memref<16x128xbf16, #tpu.memory_space<vmem>>, vector<16x128xbf16>
    %1 = arith.extf %0 : vector<16x128xbf16> to vector<16x128xf32>
    %2 = arith.mulf %1, %1 : vector<16x128xf32>
    %cst = arith.constant dense<0.000000e+00> : vector<16xf32>
    %3 = vector.multi_reduction <add>, %2, %cst [1] : vector<16x128xf32> to vector<16xf32>
    %4 = vector.shape_cast %3 : vector<16xf32> to vector<16x1xf32>
    %cst_1 = arith.constant 1.000000e-24 : f32
    %5 = vector.broadcast %cst_1 : f32 to vector<16x1xf32>
    %6 = arith.maximumf %4, %5 : vector<16x1xf32>
    %7 = math.rsqrt %6 : vector<16x1xf32>
    %8 = vector.broadcast %7 : vector<16x1xf32> to vector<16x128xf32>
    %9 = arith.mulf %1, %8 : vector<16x128xf32>
    %10 = arith.truncf %9 : vector<16x128xf32> to vector<16x128xbf16>
    %c0_2 = arith.constant 0 : index
    %c0_3 = arith.constant 0 : index
    %11 = vector.load %arg2[%c0_2, %c0_3] : memref<128x128xbf16, #tpu.memory_space<vmem>>, vector<128x128xbf16>
    %cst_4 = arith.constant dense<0.000000e+00> : vector<16x128xf32>
    %12 = tpu.matmul %10, %11, %cst_4 {dimension_numbers = #tpu.dot_dimension_numbers<[1], [1], [0], [0], [0, 0, 1, 0], [], []>} : vector<16x128xbf16>, vector<128x128xbf16>, vector<16x128xf32> -> vector<16x128xf32>
    %cst_5 = arith.constant 14.2857141 : f32
    %13 = vector.broadcast %cst_5 : f32 to vector<16x128xf32>
    %14 = arith.mulf %12, %13 : vector<16x128xf32>
    %15 = tpu.iota {dimensions = array<i32: 0>} : vector<16x128xi32>
    %16 = tpu.iota {dimensions = array<i32: 1>} : vector<16x128xi32>
    %c0_6 = arith.constant 0 : index
    %17 = memref.load %arg0[%c0_6] : memref<1xi32, #tpu.memory_space<smem>>
    %18 = vector.broadcast %17 : i32 to vector<16x128xi32>
    %19 = arith.cmpi slt, %15, %18 : vector<16x128xi32>
    %c16_i32 = arith.constant 16 : i32
    %20 = vector.broadcast %c16_i32 : i32 to vector<16x128xi32>
    %21 = arith.cmpi slt, %16, %20 : vector<16x128xi32>
    %22 = arith.andi %19, %21 : vector<16x128xi1>
    %cst_7 = arith.constant 0.000000e+00 : f32
    %23 = vector.broadcast %cst_7 : f32 to vector<16x128xf32>
    %24 = arith.select %22, %14, %23 : vector<16x128xi1>, vector<16x128xf32>
    %c0_8 = arith.constant 0 : index
    %c0_9 = arith.constant 0 : index
    %25 = vector.load %arg4[%c0_8, %c0_9] : memref<16x128xf32, #tpu.memory_space<vmem>>, vector<16x128xf32>
    tpu.vector_store %arg4[%c0_8, %c0_9], %24 {strides = array<i32>} : memref<16x128xf32, #tpu.memory_space<vmem>>, vector<16x128xf32>,
    %cst_10 = arith.constant 0xFF800000 : f32
    %26 = vector.broadcast %cst_10 : f32 to vector<16x128xf32>
    %27 = arith.select %21, %24, %26 : vector<16x128xi1>, vector<16x128xf32>
    %cst_11 = arith.constant dense<0xFF800000> : vector<16xf32>
    %28 = vector.multi_reduction <maximumf>, %27, %cst_11 [1] : vector<16x128xf32> to vector<16xf32>
    %29 = vector.shape_cast %28 : vector<16xf32> to vector<16x1xf32>
    %30 = vector.broadcast %29 : vector<16x1xf32> to vector<16x128xf32>
    %31 = arith.subf %27, %30 : vector<16x128xf32>
    %32 = math.exp %31 : vector<16x128xf32>
    %cst_12 = arith.constant dense<0.000000e+00> : vector<16xf32>
    %33 = vector.multi_reduction <add>, %32, %cst_12 [1] : vector<16x128xf32> to vector<16xf32>
    %34 = vector.shape_cast %33 : vector<16xf32> to vector<16x1xf32>
    %35 = vector.broadcast %34 : vector<16x1xf32> to vector<16x128xf32>
    %36 = arith.divf %32, %35 : vector<16x128xf32>
    %c0_13 = arith.constant 0 : index
    %c0_14 = arith.constant 0 : index
    %37 = vector.load %arg3[%c0_13, %c0_14] : memref<16x1xf32, #tpu.memory_space<vmem>>, vector<16x1xf32>
    %cst_15 = arith.constant 1.000000e+00 : f32
    %38 = vector.broadcast %cst_15 : f32 to vector<16x1xf32>
    %39 = arith.subf %38, %37 : vector<16x1xf32>
    %40 = vector.broadcast %39 : vector<16x1xf32> to vector<16x128xf32>
    %41 = arith.mulf %36, %40 : vector<16x128xf32>
    %cst_16 = arith.constant 9.99999993E-9 : f32
    %42 = vector.broadcast %cst_16 : f32 to vector<16x128xf32>
    %43 = arith.addf %41, %42 : vector<16x128xf32>
    %44 = math.log %43 : vector<16x128xf32>
    %cst_17 = arith.constant 9.99999993E-9 : f32
    %45 = vector.broadcast %cst_17 : f32 to vector<16x1xf32>
    %46 = arith.addf %37, %45 : vector<16x1xf32>
    %47 = math.log %46 : vector<16x1xf32>
    %c0_18 = arith.constant 0 : index
    %c0_19 = arith.constant 0 : index
    %48 = vector.load %arg5[%c0_18, %c0_19] : memref<16x128xf32, #tpu.memory_space<vmem>>, vector<16x128xf32>
    tpu.vector_store %arg5[%c0_18, %c0_19], %44 {strides = array<i32>} : memref<16x128xf32, #tpu.memory_space<vmem>>, vector<16x128xf32>,
    %49 = vector.shape_cast %47 : vector<16x1xf32> to vector<16x1xf32>
    %50 = vector.broadcast %49 : vector<16x1xf32> to vector<16x128xf32>
    %c0_20 = arith.constant 0 : index
    %c0_21 = arith.constant 0 : index
    %51 = vector.load %arg6[%c0_20, %c0_21] : memref<16x128xf32, #tpu.memory_space<vmem>>, vector<16x128xf32>
    tpu.vector_store %arg6[%c0_20, %c0_21], %50 {strides = array<i32>} : memref<16x128xf32, #tpu.memory_space<vmem>>, vector<16x128xf32>,
    %cst_22 = arith.constant -1.000000e+00 : f32
    %52 = vector.broadcast %cst_22 : f32 to vector<16x128xf32>
    %53 = arith.select %21, %41, %52 : vector<16x128xi1>, vector<16x128xf32>
    %cst_23 = arith.constant dense<0xFF800000> : vector<16xf32>
    %54 = vector.multi_reduction <maximumf>, %53, %cst_23 [1] : vector<16x128xf32> to vector<16xf32>
    %55 = vector.shape_cast %54 : vector<16xf32> to vector<16x1xf32>
    %56 = vector.broadcast %55 : vector<16x1xf32> to vector<16x128xf32>
    %57 = arith.cmpf oeq, %53, %56 : vector<16x128xf32>
    %58 = arith.andi %21, %57 : vector<16x128xi1>
    %c129_i32 = arith.constant 129 : i32
    %59 = vector.broadcast %c129_i32 : i32 to vector<16x128xi32>
    %60 = arith.select %58, %16, %59 : vector<16x128xi1>, vector<16x128xi32>
    %cst_24 = arith.constant dense<2147483647> : vector<16xi32>
    %61 = vector.multi_reduction <minsi>, %60, %cst_24 [1] : vector<16x128xi32> to vector<16xi32>
    %62 = vector.shape_cast %61 : vector<16xi32> to vector<16x1xi32>
    %63 = arith.cmpf oge, %55, %37 : vector<16x1xf32>
    %c16_i32_25 = arith.constant 16 : i32
    %64 = vector.broadcast %c16_i32_25 : i32 to vector<16x1xi32>
    %65 = arith.select %63, %62, %64 : vector<16x1xi1>, vector<16x1xi32>
    %66 = vector.shape_cast %65 : vector<16x1xi32> to vector<16x1xi32>
    %67 = vector.broadcast %66 : vector<16x1xi32> to vector<16x128xi32>
    %c0_26 = arith.constant 0 : index
    %c0_27 = arith.constant 0 : index
    %68 = vector.load %arg7[%c0_26, %c0_27] : memref<16x128xi32, #tpu.memory_space<vmem>>, vector<16x128xi32>
    tpu.vector_store %arg7[%c0_26, %c0_27], %67 {strides = array<i32>} : memref<16x128xi32, #tpu.memory_space<vmem>>, vector<16x128xi32>,
    %cst_28 = arith.constant 9.99999993E-9 : f32
    %69 = vector.broadcast %cst_28 : f32 to vector<16x128xf32>
    %70 = arith.addf %41, %69 : vector<16x128xf32>
    %cst_29 = arith.constant 0.000000e+00 : f32
    %71 = vector.broadcast %cst_29 : f32 to vector<16x128xf32>
    %72 = arith.select %21, %70, %71 : vector<16x128xi1>, vector<16x128xf32>
    %cst_30 = arith.constant dense<0.000000e+00> : vector<16xf32>
    %73 = vector.multi_reduction <add>, %72, %cst_30 [1] : vector<16x128xf32> to vector<16xf32>
    %74 = vector.shape_cast %73 : vector<16xf32> to vector<16x1xf32>
    %cst_31 = arith.constant 9.99999993E-9 : f32
    %75 = vector.broadcast %cst_31 : f32 to vector<16x1xf32>
    %76 = arith.addf %37, %75 : vector<16x1xf32>
    %77 = arith.addf %74, %76 : vector<16x1xf32>
    %78 = vector.broadcast %77 : vector<16x1xf32> to vector<16x128xf32>
    %79 = arith.divf %72, %78 : vector<16x128xf32>
    %80 = tpu.transpose %79, [1, 0] : vector<16x128xf32> -> vector<128x16xf32>
    %81 = arith.truncf %80 : vector<128x16xf32> to vector<128x16xbf16>
    %c0_32 = arith.constant 0 : index
    %c0_33 = arith.constant 0 : index
    %82 = vector.load %arg8[%c0_32, %c0_33] : memref<128x16xbf16, #tpu.memory_space<vmem>>, vector<128x16xbf16>
    tpu.vector_store %arg8[%c0_32, %c0_33], %81 {strides = array<i32>} : memref<128x16xbf16, #tpu.memory_space<vmem>>, vector<128x16xbf16>,
    return
  }
}

</mosaic_0001>

<bundles_post_ra>
// kernel: tpu_custom_call.1
= control target key start
LH: loop header
LB: loop body
LE: loop exit
PB: predicated region body
PF: predicated region fallthrough
CT: control target
= control target key end

     0   :  { %15 = vsyncpa [#allocation4], 0  ;;  %s983_s0 = inlined_call_operand.<no memory space> [shape: s32[1], index: 0, kind: input, shape index: {}]   ;;  %s984_s1 = inlined_call_operand.vmem [shape: bf16[16,128], index: 1, kind: input, shape index: {}]   ;;  %s985_s2 = inlined_call_operand.hbm [shape: bf16[128,128], index: 2, kind: input, shape index: {}]   ;;  %s986_s3 = inlined_call_operand.vmem [shape: f32[16,1], index: 3, kind: input, shape index: {}]   ;;  %s987_s4 = inlined_call_operand.hbm [shape: f32[16,128], index: 4, kind: output, shape index: {0}]   ;;  %s988_s5 = inlined_call_operand.hbm [shape: f32[16,128], index: 5, kind: output, shape index: {1}]   ;;  %s989_s6 = inlined_call_operand.hbm [shape: f32[16,128], index: 6, kind: output, shape index: {2}]   ;;  %s990_s7 = inlined_call_operand.hbm [shape: s32[16,128], index: 7, kind: output, shape index: {3}]   ;;  %s991_s8 = inlined_call_operand.vmem [shape: bf16[128,16], index: 8, kind: output, shape index: {4}]  }
   0x1   :  { %16 = vsyncpa [#allocation5], 0 }
   0x2   :  { %17 = vsyncpa [#allocation8], 0 }
   0x3   :  { %18 = vsyncpa [#allocation11], 0  ;;  %s735_s27 = smov [#allocation3]   ;;  %s617_s9 = scalar_lea.hbm %s985_s2, 1024 }
   0x4   :  { %s28_s28 = sshll.u32 %s735_s27, 4  ;;  %p618_p0 = scmp.ne.s32.totalorder %s985_s2, %s617_s9  ;;  %s29_s28 = int_to_ptr.vmem [resolvable:$true] %s28_s28 }
   0x5   :  { %p621_p1 = scmp.lt.u32.totalorder %s617_s9, %s985_s2 }
   0x7   :  { %p623_p2 = pnand %p621_p1, %p618_p0 }
   0x9   :  { %626 = shalt.err (!%p623_p2)
}
   0xa   :  { %s627_s14 = scalar_lea.vmem %s29_s28, 1024  ;;  %p632_p4 = scmp.lt.s32.totalorder %s29_s28, %s29_s28 }
   0xb   :  { %p628_p3 = scmp.ne.s32.totalorder %s29_s28, %s627_s14  ;;  %p633_p5 = scmp.lt.s32.totalorder %s627_s14, %s627_s14 }
   0xd   :  { %p634_p6 = por %p633_p5, %p632_p4 }
   0xf   :  { %p635_p7 = pnand %p634_p6, %p628_p3 }
  0x11   :  { %638 = shalt.err (!%p635_p7)
}
  0x12   :  { %s736_s15 = smov 64   ;;  %s737_s16 = smov 4  }
  0x13   :  { %34 = dma.hbm_to_vmem [thread:$0]  %s985_s2, 1024, %s29_s28, [#allocation4], %s736_s15, %s736_s15, %s737_s16  }
  0x14   :  { %727 = dma.done.wait [#allocation4], 1024  }
  0x15   :  { %728 = vsyncadd [#allocation4], 4294966272  ;;  %v738_v0 = vmov 0.0   ;;  %v539_v1 = vld [vmem:[%s984_s1] sm:$0xff]   ;;  %v586_v7 = vld [vmem:[#allocation3 + $0x8] sm:$0xff]   ;;  %vm739_vm0 = vmmov 0   ;;  %v165_v23 = vlaneseq  ;;  %v171_v26 = vstv %s983_s0 }
  0x16   :  { %551 = vmatprep.subr.bf16.mxu0 %v738_v0  ;;  %v540_v2 = vunpack.c.l.bf16 %v539_v1  ;;  %v541_v3 = vunpack.c.h.bf16 %v539_v1  ;;  %v585_v4 = vld [vmem:[#allocation3] sm:$0xff]   ;;  %v587_v8 = vld [vmem:[#allocation3 + $0x10] sm:$0xff]   ;;  %v588_v9 = vld [vmem:[#allocation3 + $0x18] sm:$0xff]   ;;  %567 = vmatprep.mubr.msk.bf16.mxu0 %vm739_vm0, %v738_v0  ;;  %v740_v38 = vmov 0   ;;  %s742_s25 = smov [#allocation6]  }
  0x17   :  { %552 = vmatpush3.bf16.xpose.msra.mxu0 %v585_v4  ;;  %v589_v10 = vld [vmem:[#allocation3 + $0x20] sm:$0xff]   ;;  %v590_v11 = vld [vmem:[#allocation3 + $0x28] sm:$0xff]   ;;  %v591_v12 = vld [vmem:[#allocation3 + $0x30] sm:$0xff]   ;;  %v166_v24 = vshrl.u32 %v165_v23, 7  ;;  %v807_v25 = vand.u32 127, %v165_v23  ;;  %583 = vset.pattern.permute.xlu0 %v740_v38  ;;  %s435_s26 = sshll.u32 %s742_s25, 4  ;;  %s436_s26 = int_to_ptr.vmem [resolvable:$true] %s435_s26 }
  0x18   :  { %v45_v5 = vmul.f32 %v540_v2, %v540_v2  ;;  %553 = vmatprep.subr.bf16.mxu0 %v738_v0  ;;  %v46_v6 = vmul.f32 %v541_v3, %v541_v3  ;;  %v592_v13 = vld [vmem:[#allocation3 + $0x38] sm:$0xff]   ;;  %584 = vset.pattern.permute.xlu1 %v740_v38  ;;  %v824_v47 = vld [vmem:[%s986_s3 + $0x8] sm:$0xff]  ;;  %v829_v48 = vld [vmem:[%s986_s3] sm:$0xff]  ;;  %s741_s3 = smov [#allocation7]  }
  0x19   :  { %v167_v27 = vadd.s32 8, %v166_v24  ;;  %vm172_vm1 = vcmp.lt.s32.totalorder %v166_v24, %v171_v26  ;;  %vm174_vm2 = vcmp.lt.s32.totalorder %v807_v25, 16  ;;  %v204_v49 = vsub.f32 1.0, %v824_v47  ;;  %s447_s24 = sshll.u32 %s741_s3, 4  ;;  %s448_s24 = int_to_ptr.vmem [resolvable:$true] %s447_s24 }
  0x1a   :  { %47 = vadd.xlane.f32.xlu0 %v45_v5  ;;  %vm175_vm4 = vmand %vm172_vm1, %vm174_vm2  ;;  %v203_v50 = vsub.f32 1.0, %v829_v48  ;;  %s639_s27 = scalar_lea.vmem %s448_s24, 256  ;;  %p644_p9 = scmp.lt.s32.totalorder %s448_s24, %s448_s24 }
  0x1b   :  { %vm173_vm3 = vcmp.lt.s32.totalorder %v167_v27, %v171_v26  ;;  %p640_p8 = scmp.ne.s32.totalorder %s448_s24, %s639_s27  ;;  %p645_p10 = scmp.lt.s32.totalorder %s639_s27, %s639_s27 }
  0x1c   :  { %vm176_vm5 = vmand %vm173_vm3, %vm174_vm2 }
  0x1d   :  { %p646_p11 = por %p645_p10, %p644_p9 }
  0x1e   :  { %49 = vadd.xlane.f32.xlu0 %v46_v6 }
  0x1f   :  { %554 = vmatpush3.bf16.xpose.msra.mxu0 %v586_v7  ;;  %p647_p12 = pnand %p646_p11, %p640_p8 }
  0x20   :  { %555 = vmatprep.subr.bf16.mxu0 %v738_v0 }
  0x27   :  { %556 = vmatpush3.bf16.xpose.msra.mxu0 %v587_v8 }
  0x28   :  { %557 = vmatprep.subr.bf16.mxu0 %v738_v0 }
  0x2f   :  { %558 = vmatpush3.bf16.xpose.msra.mxu0 %v588_v9 }
  0x30   :  { %559 = vmatprep.subr.bf16.mxu0 %v738_v0 }
  0x37   :  { %560 = vmatpush3.bf16.xpose.msra.mxu0 %v589_v10 }
  0x38   :  { %561 = vmatprep.subr.bf16.mxu0 %v738_v0 }
  0x3f   :  { %562 = vmatpush3.bf16.xpose.msra.mxu0 %v590_v11 }
  0x40   :  { %563 = vmatprep.subr.bf16.mxu0 %v738_v0 }
  0x47   :  { %564 = vmatpush3.bf16.xpose.msra.mxu0 %v591_v12  ;;  %v224_v12 = vadd.f32 1e-08, %v824_v47 }
  0x48   :  { %565 = vmatprep.subr.bf16.mxu0 %v738_v0 }
  0x4f   :  { %566 = vmatpush3.bf16.xpose.msra.mxu0 %v592_v13 }
  0xa7   :  { %v48_v14 = vpop.xlane.xlu0 %47 }
  0xa8   :  { %v51_v15 = vmax.f32 %v48_v14, 1e-24 }
  0xaa   :  { %593 = vrsqrt.f32 %v51_v15 }
  0xab   :  { %v50_v16 = vpop.xlane.xlu0 %49 }
  0xac   :  { %v52_v17 = vmax.f32 %v50_v16, 1e-24 }
  0xae   :  { %595 = vrsqrt.f32 %v52_v17 }
  0xb4   :  { %v594_v18 = vpop.eup %593 }
  0xb5   :  { %v55_v20 = vmul.f32 %v594_v18, %v540_v2 }
  0xb8   :  { %v596_v19 = vpop.eup %595 }
  0xb9   :  { %v56_v21 = vmul.f32 %v596_v19, %v541_v3  ;;  %v223_v19 = vadd.f32 1e-08, %v829_v48 }
  0xbb   :  { %v57_v22 = vpack.c.bf16 %v56_v21, %v55_v20 }
  0xbd   :  { %568 = vmatmul.mubr.bf16.vlgmr.msra.gmra.mrb[0].mxu0 %v57_v22 }
 0x190   :  { %v156_v28 = vpop.f32.mrb[0].mxu0 }
 0x191   :  { %v163_v29 = vmul.f32 14.285714, %v156_v28  ;;  %v569_v30 = vpop.f32.mrb[1].mxu0 }
 0x192   :  { %v159_v31 = vpop.f32.mrb[2].mxu0 }
 0x193   :  { %v164_v32 = vmul.f32 14.285714, %v159_v31  ;;  %v570_v33 = vpop.f32.mrb[3].mxu0  ;;  %v177_v34 = vsel %vm175_vm4, %v163_v29, 0.0 }
 0x194   :  { %v181_v35 = vsel %vm174_vm2, %v177_v34, -inf  ;;  %179 = vst [vmem:[#allocation6] sm:$0xff] %v177_v34 }
 0x195   :  { %183 = vmax.xlane.f32.xlu1 %v181_v35  ;;  %v178_v36 = vsel %vm176_vm5, %v164_v32, 0.0 }
 0x196   :  { %180 = vst [vmem:[#allocation6 + $0x8] sm:$0xff] %v178_v36  ;;  %v182_v37 = vsel %vm174_vm2, %v178_v36, -inf }
 0x199   :  { %185 = vmax.xlane.f32.xlu1 %v182_v37 }
 0x222   :  { %v184_v39 = vpop.xlane.xlu1 %183 }
 0x223   :  { %v187_v40 = vsub.f32 %v181_v35, %v184_v39 }
 0x225   :  { %v189_v41 = vmul.f32 1.442695, %v187_v40 }
 0x226   :  { %v186_v42 = vpop.xlane.xlu1 %185 }
 0x227   :  { %597 = vpow2.f32 %v189_v41  ;;  %v188_v43 = vsub.f32 %v182_v37, %v186_v42 }
 0x229   :  { %v191_v44 = vmul.f32 1.442695, %v188_v43 }
 0x22b   :  { %599 = vpow2.f32 %v191_v44 }
 0x231   :  { %v598_v45 = vpop.eup %597 }
 0x232   :  { %193 = vadd.xlane.f32.xlu0 %v598_v45 }
 0x235   :  { %v600_v46 = vpop.eup %599 }
 0x236   :  { %195 = vadd.xlane.f32.xlu1 %v600_v46 }
 0x247   :  { %212 = vperm.xlu1 %584, %v204_v49  }
 0x248   :  { %207 = vperm.xlu0 %583, %v203_v50  }
 0x2bf   :  { %v194_v51 = vpop.xlane.xlu0 %193 }
 0x2c0   :  { %601 = vrcp.f32 %v194_v51 }
 0x2c3   :  { %v196_v52 = vpop.xlane.xlu1 %195 }
 0x2c4   :  { %603 = vrcp.f32 %v196_v52 }
 0x2c7   :  { %v208_v54 = vpop.permute.xlu0 %207  ;;  %v213_v58 = vpop.permute.xlu1 %212 }
 0x2ca   :  { %v602_v53 = vpop.eup %601 }
 0x2cb   :  { %v198_v55 = vmul.f32 %v602_v53, %v598_v45 }
 0x2cd   :  { %v215_v56 = vmul.f32 %v208_v54, %v198_v55 }
 0x2ce   :  { %v604_v57 = vpop.eup %603 }
 0x2cf   :  { %v243_v59 = vsel %vm174_vm2, %v215_v56, -1.0  ;;  %v200_v60 = vmul.f32 %v604_v57, %v600_v46  ;;  %v217_v61 = vadd.f32 1e-08, %v215_v56 }
 0x2d0   :  { %245 = vmax.xlane.f32.xlu1 %v243_v59 }
 0x2d1   :  { %v216_v62 = vmul.f32 %v213_v58, %v200_v60  ;;  %605 = vlog2.f32 %v217_v61  ;;  %v295_v63 = vsel %vm174_vm2, %v217_v61, 0.0 }
 0x2d3   :  { %v244_v0 = vsel %vm174_vm2, %v216_v62, -1.0  ;;  %v218_v1 = vadd.f32 1e-08, %v216_v62 }
 0x2d4   :  { %297 = vadd.xlane.f32.xlu1 %v295_v63  ;;  %247 = vmax.xlane.f32.xlu0 %v244_v0 }
 0x2d5   :  { %607 = vlog2.f32 %v218_v1  ;;  %v296_v2 = vsel %vm174_vm2, %v218_v1, 0.0 }
 0x2d6   :  { %609 = vlog2.f32 %v223_v19 }
 0x2d7   :  { %611 = vlog2.f32 %v224_v12 }
 0x2d8   :  { %299 = vadd.xlane.f32.xlu1 %v296_v2 }
 0x2db   :  { %v606_v3 = vpop.eup %605 }
 0x2dc   :  { %v220_v4 = vmul.f32 0.6931472, %v606_v3 }
 0x2de   :  { %229 = vst [vmem:[#allocation7] sm:$0xff] %v220_v4 }
 0x2df   :  { %v608_v5 = vpop.eup %607 }
 0x2e0   :  { %v222_v6 = vmul.f32 0.6931472, %v608_v5  ;;  %v610_v29 = vpop.eup %609 }
 0x2e1   :  { %v226_v30 = vmul.f32 0.6931472, %v610_v29  ;;  %v612_v31 = vpop.eup %611 }
 0x2e2   :  { %230 = vst [vmem:[#allocation7 + $0x8] sm:$0xff] %v222_v6  ;;  %v228_v32 = vmul.f32 0.6931472, %v612_v31 }
 0x35d   :  { %v841_v7 = vpop.xlane.xlu1 %245 }
 0x35e   :  { %vm249_vm6 = vcmp.eq.f32.partialorder %v243_v59, %v841_v7  ;;  %vm283_vm12 = vcmp.ge.f32.partialorder %v841_v7, %v829_v48 }
 0x35f   :  { %vm251_vm7 = vmand %vm174_vm2, %vm249_vm6 }
 0x360   :  { %v253_v8 = vsel %vm251_vm7, %v807_v25, 129 }
 0x361   :  { %v847_v9 = vpop.xlane.xlu0 %247  ;;  %v298_v10 = vpop.xlane.xlu1 %297  ;;  %v256_v11 = vshra.s32 %v253_v8, 16  ;;  %v255_v21 = vand.u32 65535, %v253_v8 }
 0x362   :  { %vm250_vm8 = vcmp.eq.f32.partialorder %v244_v0, %v847_v9  ;;  %v301_v20 = vadd.f32 %v298_v10, %v223_v19  ;;  %vm284_vm13 = vcmp.ge.f32.partialorder %v847_v9, %v824_v47 }
 0x363   :  { %vm252_vm9 = vmand %vm174_vm2, %vm250_vm8  ;;  %v258_v13 = vcvt.s32.f32 %v256_v11  ;;  %v257_v23 = vcvt.s32.f32 %v255_v21 }
 0x364   :  { %v254_v14 = vsel %vm252_vm9, %v807_v25, 129 }
 0x365   :  { %259 = vmin.xlane.f32.xlu1 %v258_v13  ;;  %v300_v15 = vpop.xlane.xlu1 %299  ;;  %v270_v16 = vshra.s32 %v254_v14, 16  ;;  %v269_v24 = vand.u32 65535, %v254_v14 }
 0x366   :  { %v302_v17 = vadd.f32 %v300_v15, %v224_v12 }
 0x367   :  { %v272_v18 = vcvt.s32.f32 %v270_v16  ;;  %v271_v25 = vcvt.s32.f32 %v269_v24 }
 0x368   :  { %310 = vperm.xlu0 %583, %v302_v17  }
 0x369   :  { %273 = vmin.xlane.f32.xlu1 %v272_v18 }
 0x37a   :  { %305 = vperm.xlu1 %584, %v301_v20  }
 0x3e7   :  { %v311_v34 = vpop.permute.xlu0 %310 }
 0x3f2   :  { %v260_v22 = vpop.xlane.xlu1 %259 }
 0x3f3   :  { %vm261_vm10 = vcmp.eq.f32.partialorder %v258_v13, %v260_v22  ;;  %v266_v39 = vcvt.f32.s32 %v260_v22 }
 0x3f4   :  { %v262_v26 = vsel %vm261_vm10, %v257_v23, inf }
 0x3f5   :  { %263 = vmin.xlane.f32.xlu1 %v262_v26  ;;  %v267_v41 = vshll.u32 %v266_v39, 16 }
 0x3f6   :  { %v274_v27 = vpop.xlane.xlu1 %273 }
 0x3f7   :  { %vm275_vm11 = vcmp.eq.f32.partialorder %v272_v18, %v274_v27  ;;  %v280_v42 = vcvt.f32.s32 %v274_v27 }
 0x3f8   :  { %v276_v28 = vsel %vm275_vm11, %v271_v25, inf }
 0x3f9   :  { %277 = vmin.xlane.f32.xlu0 %v276_v28  ;;  %v281_v46 = vshll.u32 %v280_v42, 16 }
 0x3fa   :  { %v306_v33 = vpop.permute.xlu1 %305 }
 0x3fb   :  { %613 = vrcp.f32 %v306_v33 }
 0x3fc   :  { %615 = vrcp.f32 %v311_v34 }
 0x405   :  { %v614_v35 = vpop.eup %613 }
 0x406   :  { %v314_v36 = vmul.f32 %v614_v35, %v295_v63  ;;  %v616_v37 = vpop.eup %615 }
 0x407   :  { %v316_v38 = vmul.f32 %v616_v37, %v296_v2 }
 0x40f   :  { %233 = vperm.xlu0 %583, %v226_v30  }
 0x413   :  { %238 = vperm.xlu0 %583, %v228_v32  }
 0x428   :  { %317 = vxpose.xlu1.b32.start [1/2] (short) %v314_v36, 128 }
 0x42c   :  { %318 = vxpose.xlu1.b32.end [2/2] (short) %v316_v38, 128 }
 0x482   :  { %v264_v40 = vpop.xlane.xlu1 %263 }
 0x483   :  { %v265_v43 = vcvt.f32.s32 %v264_v40 }
 0x485   :  { %v268_v44 = vadd.s32 %v267_v41, %v265_v43 }
 0x486   :  { %v278_v45 = vpop.xlane.xlu0 %277 }
 0x487   :  { %v279_v49 = vcvt.f32.s32 %v278_v45  ;;  %v285_v50 = vsel %vm283_vm12, %v268_v44, 16 }
 0x488   :  { %288 = vperm.xlu0 %583, %v285_v50  }
 0x489   :  { %v282_v51 = vadd.s32 %v281_v46, %v279_v49 }
 0x48b   :  { %v286_v52 = vsel %vm284_vm13, %v282_v51, 16 }
 0x48c   :  { %291 = vperm.xlu0 %583, %v286_v52  }
 0x48d   :  { %650 = shalt.err (!%p647_p12)
}
 0x48e   :  { %s651_s30 = scalar_lea.hbm %s988_s5, 256 }
 0x48f   :  { %p652_p13 = scmp.ne.s32.totalorder %s988_s5, %s651_s30  ;;  %p655_p0 = scmp.lt.u32.totalorder %s651_s30, %s988_s5 }
 0x491   :  { %p657_p1 = pnand %p655_p0, %p652_p13 }
 0x493   :  { %660 = shalt.err (!%p657_p1)
}
 0x494   :  { %s743_s13 = smov 128   ;;  %s744_s14 = smov 8   ;;  %v234_v47 = vpop.permute.xlu0 %233 }
 0x495   :  { %453 = dma.vmem_to_hbm [thread:$0]  %s448_s24, 256, %s988_s5, [#allocation8], %s743_s13, %s743_s13, %s744_s14   ;;  %241 = vst [vmem:[#allocation9] sm:$0xff] %v234_v47 }
 0x496   :  { %s661_s17 = scalar_lea.vmem %s436_s26, 256  ;;  %p666_p3 = scmp.lt.s32.totalorder %s436_s26, %s436_s26 }
 0x497   :  { %p662_p2 = scmp.ne.s32.totalorder %s436_s26, %s661_s17  ;;  %p667_p4 = scmp.lt.s32.totalorder %s661_s17, %s661_s17 }
 0x499   :  { %p668_p5 = por %p667_p4, %p666_p3 }
 0x49b   :  { %p669_p6 = pnand %p668_p5, %p662_p2 }
 0x49d   :  { %672 = shalt.err (!%p669_p6)
}
 0x49e   :  { %s673_s20 = scalar_lea.hbm %s987_s4, 256 }
 0x49f   :  { %p674_p7 = scmp.ne.s32.totalorder %s987_s4, %s673_s20  ;;  %p677_p8 = scmp.lt.u32.totalorder %s673_s20, %s987_s4 }
 0x4a1   :  { %p679_p9 = pnand %p677_p8, %p674_p7 }
 0x4a3   :  { %682 = shalt.err (!%p679_p9)
}
 0x4a4   :  { %441 = dma.vmem_to_hbm [thread:$0]  %s436_s26, 256, %s987_s4, [#allocation5], %s743_s13, %s743_s13, %s744_s14   ;;  %v239_v48 = vpop.permute.xlu0 %238 }
 0x4a5   :  { %s745_s23 = smov [#allocation9]   ;;  %242 = vst [vmem:[#allocation9 + $0x8] sm:$0xff] %v239_v48 }
 0x4a6   :  { %s459_s3 = sshll.u32 %s745_s23, 4  ;;  %s460_s3 = int_to_ptr.vmem [resolvable:$true] %s459_s3 }
 0x4a7   :  { %s683_s24 = scalar_lea.vmem %s460_s3, 256  ;;  %p688_p11 = scmp.lt.s32.totalorder %s460_s3, %s460_s3 }
 0x4a8   :  { %p684_p10 = scmp.ne.s32.totalorder %s460_s3, %s683_s24  ;;  %p689_p12 = scmp.lt.s32.totalorder %s683_s24, %s683_s24 }
 0x4aa   :  { %p690_p13 = por %p689_p12, %p688_p11 }
 0x4ac   :  { %p691_p0 = pnand %p690_p13, %p684_p10 }
 0x4ae   :  { %694 = shalt.err (!%p691_p0)
}
 0x4af   :  { %s695_s28 = scalar_lea.hbm %s989_s6, 256 }
 0x4b0   :  { %p696_p1 = scmp.ne.s32.totalorder %s989_s6, %s695_s28  ;;  %p699_p2 = scmp.lt.u32.totalorder %s695_s28, %s989_s6 }
 0x4b2   :  { %p701_p3 = pnand %p699_p2, %p696_p1 }
 0x4b4   :  { %704 = shalt.err (!%p701_p3)
}
 0x4b5   :  { %465 = dma.vmem_to_hbm [thread:$0]  %s460_s3, 256, %s989_s6, [#allocation8], %s743_s13, %s743_s13, %s744_s14   ;;  %vm413_vm14 = vcmask 125952   ;;  %v333_v53 = vpop.trf.xlu1 }
 0x4b6   :  { %v522_v54 = vpack.c.bf16 %v333_v53, %v333_v53  ;;  %s746_s6 = smov [#allocation10]  }
 0x4b7   :  { %s471_s18 = sshll.u32 %s746_s6, 4  ;;  %s472_s18 = int_to_ptr.vmem [resolvable:$true] %s471_s18 }
 0x4b8   :  { %414 = vst.msk [vmem:[%s991_s8] sm:$0xf] %vm413_vm14, %v522_v54  ;;  %s705_s19 = scalar_lea.vmem %s472_s18, 256  ;;  %p710_p5 = scmp.lt.s32.totalorder %s472_s18, %s472_s18 }
 0x4b9   :  { %v334_v55 = vpop.trf.xlu1  ;;  %p706_p4 = scmp.ne.s32.totalorder %s472_s18, %s705_s19  ;;  %p711_p6 = scmp.lt.s32.totalorder %s705_s19, %s705_s19 }
 0x4ba   :  { %v523_v56 = vpack.c.bf16 %v334_v55, %v334_v55 }
 0x4bb   :  { %p712_p7 = por %p711_p6, %p710_p5 }
 0x4bc   :  { %415 = vst.msk [vmem:[%s991_s8 + $0x4] sm:$0xf] %vm413_vm14, %v523_v56 }
 0x4bd   :  { %v335_v57 = vpop.trf.xlu1  ;;  %p713_p8 = pnand %p712_p7, %p706_p4 }
 0x4be   :  { %v524_v58 = vpack.c.bf16 %v335_v57, %v335_v57 }
 0x4c0   :  { %416 = vst.msk [vmem:[%s991_s8 + $0x8] sm:$0xf] %vm413_vm14, %v524_v58 }
 0x4c1   :  { %v336_v59 = vpop.trf.xlu1 }
 0x4c2   :  { %v525_v60 = vpack.c.bf16 %v336_v59, %v336_v59 }
 0x4c4   :  { %417 = vst.msk [vmem:[%s991_s8 + $0xc] sm:$0xf] %vm413_vm14, %v525_v60 }
 0x4c5   :  { %v337_v61 = vpop.trf.xlu1 }
 0x4c6   :  { %v526_v62 = vpack.c.bf16 %v337_v61, %v337_v61 }
 0x4c8   :  { %418 = vst.msk [vmem:[%s991_s8 + $0x10] sm:$0xf] %vm413_vm14, %v526_v62 }
 0x4c9   :  { %v338_v63 = vpop.trf.xlu1 }
 0x4ca   :  { %v527_v0 = vpack.c.bf16 %v338_v63, %v338_v63 }
 0x4cc   :  { %419 = vst.msk [vmem:[%s991_s8 + $0x14] sm:$0xf] %vm413_vm14, %v527_v0 }
 0x4cd   :  { %v339_v1 = vpop.trf.xlu1 }
 0x4ce   :  { %v528_v2 = vpack.c.bf16 %v339_v1, %v339_v1 }
 0x4d0   :  { %420 = vst.msk [vmem:[%s991_s8 + $0x18] sm:$0xf] %vm413_vm14, %v528_v2 }
 0x4d1   :  { %v340_v3 = vpop.trf.xlu1 }
 0x4d2   :  { %v529_v4 = vpack.c.bf16 %v340_v3, %v340_v3 }
 0x4d4   :  { %421 = vst.msk [vmem:[%s991_s8 + $0x1c] sm:$0xf] %vm413_vm14, %v529_v4 }
 0x4d5   :  { %v341_v5 = vpop.trf.xlu1 }
 0x4d6   :  { %v530_v6 = vpack.c.bf16 %v341_v5, %v341_v5 }
 0x4d8   :  { %422 = vst.msk [vmem:[%s991_s8 + $0x20] sm:$0xf] %vm413_vm14, %v530_v6 }
 0x4d9   :  { %v342_v7 = vpop.trf.xlu1 }
 0x4da   :  { %v531_v8 = vpack.c.bf16 %v342_v7, %v342_v7 }
 0x4dc   :  { %423 = vst.msk [vmem:[%s991_s8 + $0x24] sm:$0xf] %vm413_vm14, %v531_v8 }
 0x4dd   :  { %v343_v9 = vpop.trf.xlu1 }
 0x4de   :  { %v532_v10 = vpack.c.bf16 %v343_v9, %v343_v9 }
 0x4e0   :  { %424 = vst.msk [vmem:[%s991_s8 + $0x28] sm:$0xf] %vm413_vm14, %v532_v10 }
 0x4e1   :  { %v344_v11 = vpop.trf.xlu1 }
 0x4e2   :  { %v533_v12 = vpack.c.bf16 %v344_v11, %v344_v11 }
 0x4e4   :  { %425 = vst.msk [vmem:[%s991_s8 + $0x2c] sm:$0xf] %vm413_vm14, %v533_v12 }
 0x4e5   :  { %v345_v13 = vpop.trf.xlu1 }
 0x4e6   :  { %v534_v14 = vpack.c.bf16 %v345_v13, %v345_v13 }
 0x4e8   :  { %426 = vst.msk [vmem:[%s991_s8 + $0x30] sm:$0xf] %vm413_vm14, %v534_v14 }
 0x4e9   :  { %v346_v15 = vpop.trf.xlu1 }
 0x4ea   :  { %v535_v16 = vpack.c.bf16 %v346_v15, %v346_v15 }
 0x4ec   :  { %427 = vst.msk [vmem:[%s991_s8 + $0x34] sm:$0xf] %vm413_vm14, %v535_v16 }
 0x4ed   :  { %v347_v17 = vpop.trf.xlu1 }
 0x4ee   :  { %v536_v18 = vpack.c.bf16 %v347_v17, %v347_v17 }
 0x4f0   :  { %428 = vst.msk [vmem:[%s991_s8 + $0x38] sm:$0xf] %vm413_vm14, %v536_v18 }
 0x4f1   :  { %v348_v19 = vpop.trf.xlu1 }
 0x4f2   :  { %v537_v20 = vpack.c.bf16 %v348_v19, %v348_v19 }
 0x4f4   :  { %429 = vst.msk [vmem:[%s991_s8 + $0x3c] sm:$0xf] %vm413_vm14, %v537_v20 }
 0x507   :  { %v289_v21 = vpop.permute.xlu0 %288 }
 0x508   :  { %293 = vst [vmem:[#allocation10] sm:$0xff] %v289_v21 }
 0x50b   :  { %v292_v22 = vpop.permute.xlu0 %291 }
 0x50c   :  { %294 = vst [vmem:[#allocation10 + $0x8] sm:$0xff] %v292_v22 }
 0x50d   :  { %716 = shalt.err (!%p713_p8)
}
 0x50e   :  { %s717_s2 = scalar_lea.hbm %s990_s7, 256 }
 0x50f   :  { %p718_p9 = scmp.ne.s32.totalorder %s990_s7, %s717_s2  ;;  %p721_p10 = scmp.lt.u32.totalorder %s717_s2, %s990_s7 }
 0x511   :  { %p723_p11 = pnand %p721_p10, %p718_p9 }
 0x513   :  { %726 = shalt.err (!%p723_p11)
}
 0x514   :  { %477 = dma.vmem_to_hbm [thread:$0]  %s472_s18, 256, %s990_s7, [#allocation11], %s743_s13, %s743_s13, %s744_s14  }
 0x515   :  { %729 = dma.done.wait [#allocation5], 256  }
 0x516   :  { %730 = vsyncadd [#allocation5], 4294967040 }
 0x517   :  { %731 = dma.done.wait [#allocation8], 512  }
 0x518   :  { %732 = vsyncadd [#allocation8], 4294966784 }
 0x519   :  { %733 = dma.done.wait [#allocation11], 256  }
 0x51a   :  { %734 = vsyncadd [#allocation11], 4294967040 }
 0x51b   :  { %494 = vsyncpa [#allocation4], 1 }
 0x51c   :  { %495 = vsyncpa [#allocation5], 1 }
 0x51d   :  { %496 = vsyncpa [#allocation8], 1 }
 0x51e   :  { %497 = vsyncpa [#allocation11], 1 }

</bundles_post_ra>
